<compile_context>
chip_gen: v6e
topology: v6e:2x2x1
jax: 0.10.0
libtpu: 0.0.40
codegen_flags: <defaults>
</compile_context>

<pallas_src>
import jax
import jax.numpy as jnp
from jax.experimental import pallas as pl
from jax.experimental.pallas import tpu as pltpu


def _round_up(x, m):
    return (x + m - 1) // m * m


def _block_diag_groups(w, n_groups):
    """[D, M_in, M_out] LocallyConnected weight -> per-group block-diagonal
    weights stacked as [n_groups, G*M_in, G*M_out] with G = D // n_groups."""
    d, m_in, m_out = w.shape
    g = d // n_groups
    wg = w.reshape(n_groups, g, m_in, m_out)
    eye = jnp.eye(g, dtype=w.dtype)
    bd = wg[:, :, :, None, :] * eye[None, :, None, :, None]  # [ng, G, Mi, G, Mo]
    return bd.reshape(n_groups, g * m_in, g * m_out)


def _make_kernel(num_lc, act_dtype):
    def kernel(x_ref, w1_ref, b1_ref, *rest):
        o_ref = rest[-1]
        lc_refs = rest[:-1]

        # fc1_pos(x) - fc1_neg(x) folded into one MXU matmul: x @ (Wp-Wn)^T + (bp-bn).
        y = jnp.dot(x_ref[...], w1_ref[...],
                    preferred_element_type=jnp.float32) + b1_ref[...]

        # Each LocallyConnected layer: sigmoid (single EUP tanh), then one
        # lane-dense block-diagonal matmul on the flat [tile_n, G*M] layout.
        for l in range(num_lc):
            w_ref = lc_refs[2 * l]
            b_ref = lc_refs[2 * l + 1]
            a = y.astype(act_dtype)
            a = 0.5 * (jnp.tanh(0.5 * a) + 1.0)       # sigmoid via one EUP push
            y = jnp.dot(a.astype(w_ref.dtype), w_ref[...],
                        preferred_element_type=jnp.float32) + b_ref[...]

        # Last layer has M_out == 1, so y is [tile_n, G]: squeeze is implicit.
        o_ref[...] = y.astype(o_ref.dtype)

    return kernel


def notears_mlp_forward(x, params, dims, *, max_tile_n=1024,
                        matmul_dtype=jnp.float32, n_groups=None,
                        single_buffer_weights=True):
    """NotearsMLP forward as a single fused, (group x batch)-tiled Pallas kernel."""
    n, d = x.shape
    assert dims[0] == d and dims[-1] == 1
    m1 = dims[1]
    num_lc = len(params["fc2"])
    elt = jnp.dtype(matmul_dtype).itemsize
    act_dtype = matmul_dtype                      # bf16 sigmoid on the bf16 path
    act_elt = jnp.dtype(act_dtype).itemsize

    # ---- physical VMEM (conservative v7x-sized fallback if query unavailable) ----
    try:
        phys_vmem = int(pltpu.get_tpu_info().vmem_capacity_bytes)
    except Exception:
        phys_vmem = 64 << 20

    # ---- group tiling over variables -----------------------------------------
    def _weight_bytes(g):
        wb = d * (g * m1) * elt + (g * m1) * 4                 # fc1 slice + bias
        m_in = m1
        for (w, _b) in params["fc2"]:
            m_out = w.shape[2]
            wb += (g * m_in) * (g * m_out) * elt + (g * m_out) * 4
            m_in = m_out
        return wb

    if n_groups is None:
        weight_budget = min(8 << 20, phys_vmem // 8)
        n_groups = d
        for cand in sorted(g for g in range(1, d + 1) if d % g == 0):
            if _weight_bytes(d // cand) <= weight_budget:
                n_groups = cand                    # smallest #groups that fits
                break
    assert d % n_groups == 0
    G = d // n_groups

    m_outs = [w.shape[2] for (w, _b) in params["fc2"]]
    widths = [G * m1] + [G * mo for mo in m_outs]  # activation width after each matmul
    gm_max = max(widths)
    g_out = widths[-1]                              # == G (dims[-1] == 1)

    use_single = single_buffer_weights and n_groups == 1
    w_bytes = _weight_bytes(G)
    w_buf_bytes = w_bytes * (1 if use_single else 2)

    # ---- batch tiling: minimize padding, respect bf16 sublane packing ---------
    sub = 16 if jnp.dtype(matmul_dtype) == jnp.dtype(jnp.bfloat16) else 8
    budget = int(phys_vmem * 0.7)
    per_row = (d * elt * 2                # x tile, double-buffered
               + g_out * 4 * 2            # output tile, double-buffered
               + 3 * gm_max * 4           # live f32 intermediates
               + gm_max * act_elt)        # sigmoid activation fed to the MXU
    tile_cap = max(sub, ((budget - w_buf_bytes) // max(per_row, 1)) // sub * sub)
    eff_max_tile = max(sub, min(max_tile_n, tile_cap))

    n_tiles = max(1, pl.cdiv(n, eff_max_tile))
    # v7x megacore: give the grid >= 2 steps when it costs no extra padding.
    if n_tiles * n_groups < 2 and n >= 2 * sub:
        n_tiles = 2
    tile_n = _round_up(pl.cdiv(n, n_tiles), sub)
    n_pad = tile_n * n_tiles

    # ---- host-side weight prep (once, independent of the grid) ----------------
    w1 = (params["fc1_pos_w"] - params["fc1_neg_w"]).T                 # [D, D*M1]
    w1_g = (w1.reshape(d, n_groups, G * m1)
              .transpose(1, 0, 2).astype(matmul_dtype))                # [ng, D, G*M1]
    b1 = (params["fc1_pos_b"] - params["fc1_neg_b"]).astype(jnp.float32)
    b1_g = b1.reshape(n_groups, 1, G * m1)                             # [ng, 1, G*M1]

    lc_args = []
    lc_mults = []
    m_in = m1
    for (w, b) in params["fc2"]:
        m_out = w.shape[2]
        lc_args.append(_block_diag_groups(w, n_groups).astype(matmul_dtype))
        lc_args.append(b.astype(jnp.float32).reshape(n_groups, 1, G * m_out))
        lc_mults.append((G * m_in, G * m_out))
        m_in = m_out

    x_p = x.astype(matmul_dtype)
    if n_pad != n:
        x_p = jnp.pad(x_p, ((0, n_pad - n), (0, 0)))

    # ---- explicit VMEM limit + advisory cost estimate --------------------------
    vmem_need = w_buf_bytes + tile_n * per_row
    vmem_limit = int(min(max(vmem_need * 3 // 2 + (4 << 20), 32 << 20),
                         int(phys_vmem * 0.9)))

    flops = 2 * n_pad * d * (G * m1) * n_groups            # fc1 (dense), issued
    transcendentals = 0
    for (k_dim, n_dim) in lc_mults:
        flops += 2 * n_pad * k_dim * n_dim * n_groups      # block-diag MXU FLOPs issued
        transcendentals += n_pad * k_dim * n_groups        # one tanh per pre-activation
    bytes_accessed = (int(x_p.size) * elt + n_groups * n_pad * g_out * 4
                      + int(w1_g.size) * elt + int(b1_g.size) * 4
                      + sum(int(a.size) * a.dtype.itemsize for a in lc_args))

    grid = (n_groups, n_tiles)

    def _call(single_buffer):
        def _wspec(shape):
            spec_shape = (None,) + tuple(shape[1:])        # squeeze the group axis
            if single_buffer:
                return pl.BlockSpec(spec_shape, lambda g, i: (g, 0, 0),
                                    pipeline_mode=pl.Buffered(1))
            return pl.BlockSpec(spec_shape, lambda g, i: (g, 0, 0))

        in_specs = [pl.BlockSpec((tile_n, d), lambda g, i: (i, 0)),
                    _wspec(w1_g.shape), _wspec(b1_g.shape)]
        in_specs += [_wspec(a.shape) for a in lc_args]
        out_specs = pl.BlockSpec((None, tile_n, g_out), lambda g, i: (g, i, 0))

        return pl.pallas_call(
            _make_kernel(num_lc, act_dtype),
            grid=grid,
            in_specs=in_specs,
            out_specs=out_specs,
            out_shape=jax.ShapeDtypeStruct((n_groups, n_pad, g_out), jnp.float32),
            compiler_params=pltpu.CompilerParams(
                dimension_semantics=("parallel", "parallel"),
                vmem_limit_bytes=vmem_limit),
            cost_estimate=pl.CostEstimate(
                flops=flops,
                transcendentals=transcendentals,
                bytes_accessed=bytes_accessed),
        )(x_p, w1_g, b1_g, *lc_args)

    if use_single:
        try:
            out = _call(True)
        except Exception:
            # Installed Pallas rejected single-buffered specs: retry with defaults.
            out = _call(False)
    else:
        out = _call(False)

    # [ng, N_pad, G] -> [N, d]  (variables are grouped contiguously per group).
    out = jnp.transpose(out, (1, 0, 2)).reshape(n_pad, n_groups * g_out)
    return out[:n]


def ref_forward(x, params, dims):
    """Plain-JAX reference matching the PyTorch forward."""
    d, m1 = dims[0], dims[1]
    pos = x @ params["fc1_pos_w"].T + params["fc1_pos_b"]
    neg = x @ params["fc1_neg_w"].T + params["fc1_neg_b"]
    y = (pos - neg).reshape(-1, d, m1)
    for (w, b) in params["fc2"]:
        y = jax.nn.sigmoid(y)
        y = jnp.einsum("ndi,dio->ndo", y, w) + b[None]
    return y[..., 0]


def init_params(key, dims):
    d, m1 = dims[0], dims[1]
    keys = jax.random.split(key, 4 + 2 * (len(dims) - 2))
    params = {
        "fc1_pos_w": 0.1 * jax.random.normal(keys[0], (d * m1, d), jnp.float32),
        "fc1_pos_b": 0.1 * jax.random.normal(keys[1], (d * m1,), jnp.float32),
        "fc1_neg_w": 0.1 * jax.random.normal(keys[2], (d * m1, d), jnp.float32),
        "fc1_neg_b": 0.1 * jax.random.normal(keys[3], (d * m1,), jnp.float32),
        "fc2": [],
    }
    # LocallyConnected(d, dims[i+1], dims[i+2]) for i in range(len(dims) - 2)
    for i in range(len(dims) - 2):
        kw = keys[4 + 2 * i]
        kb = keys[5 + 2 * i]
        w = 0.1 * jax.random.normal(kw, (d, dims[i + 1], dims[i + 2]), jnp.float32)
        b = 0.1 * jax.random.normal(kb, (d, dims[i + 2]), jnp.float32)
        params["fc2"].append((w, b))
    return params


if __name__ == "__main__":
    key = jax.random.PRNGKey(0)
    k_x, k_p, k_x2, k_p2 = jax.random.split(key, 4)

    # ---- config 1: dims = [d, m1, m2, 1] -> two LocallyConnected layers ----
    dims = [4, 16, 8, 1]
    n = 8
    x = jax.random.normal(k_x, (n, dims[0]), jnp.float32)
    params = init_params(k_p, dims)
    ref = ref_forward(x, params, dims)

    out = jax.block_until_ready(notears_mlp_forward(x, params, dims))
    assert out.shape == (n, dims[0]), out.shape
    assert jnp.allclose(out, ref, atol=1e-5, rtol=1e-5), "f32 mismatch vs reference"

    # bf16 MXU operands (fine on v5e too: bf16-native MXU), bf16 sigmoid on the
    # EUP, f32 accumulation/bias -> small, bounded error vs the f32 reference.
    out_bf16 = jax.block_until_ready(
        notears_mlp_forward(x, params, dims, matmul_dtype=jnp.bfloat16))
    assert out_bf16.shape == (n, dims[0]), out_bf16.shape
    assert jnp.allclose(out_bf16, ref, atol=5e-2, rtol=5e-2), "bf16 mismatch vs reference"

    # ---- config 2: exercise the group-tiled (2-D grid) + multi-batch-tile path ----
    dims2 = [6, 8, 1]
    n2 = 40
    x2 = jax.random.normal(k_x2, (n2, dims2[0]), jnp.float32)
    params2 = init_params(k_p2, dims2)
    ref2 = ref_forward(x2, params2, dims2)
    out2 = jax.block_until_ready(
        notears_mlp_forward(x2, params2, dims2, max_tile_n=16, n_groups=3))
    assert out2.shape == (n2, dims2[0]), out2.shape
    assert jnp.allclose(out2, ref2, atol=1e-5, rtol=1e-5), "group-tiled mismatch vs ref"

    # TODO(synk): h_func / l2_reg / fc1_l1_reg / fc1_to_adj are training-time
    # regularizers (not part of forward) and are not implemented here.
    print("KERNEL_OK")
</pallas_src>

<mosaic_0001>
module attributes {stable_mosaic.version = 11 : i64} {
  func.func @kernel(%arg0: i32, %arg1: i32, %arg2: memref<8x4xf32, #tpu.memory_space<vmem>>, %arg3: memref<1x4x64xf32, #tpu.memory_space<vmem>>, %arg4: memref<1x1x64xf32, #tpu.memory_space<vmem>>, %arg5: memref<1x64x32xf32, #tpu.memory_space<vmem>>, %arg6: memref<1x1x32xf32, #tpu.memory_space<vmem>>, %arg7: memref<1x32x4xf32, #tpu.memory_space<vmem>>, %arg8: memref<1x1x4xf32, #tpu.memory_space<vmem>>, %arg9: memref<1x8x4xf32, #tpu.memory_space<vmem>>) attributes {dimension_semantics = [#tpu.dimension_semantics<parallel>, #tpu.dimension_semantics<parallel>], iteration_bounds = array<i64: 1, 1>, scalar_prefetch = 0 : i64, scratch_operands = 0 : i64, tpu.core_type = #tpu.core_type<tc>, window_params = [{transform_indices = @transform_0, window_bounds = array<i64: 8, 4>}, {pipeline_mode = #tpu.pipeline_mode<synchronous>, transform_indices = @transform_1, window_bounds = array<i64: 1, 4, 64>}, {pipeline_mode = #tpu.pipeline_mode<synchronous>, transform_indices = @transform_2, window_bounds = array<i64: 1, 1, 64>}, {pipeline_mode = #tpu.pipeline_mode<synchronous>, transform_indices = @transform_3, window_bounds = array<i64: 1, 64, 32>}, {pipeline_mode = #tpu.pipeline_mode<synchronous>, transform_indices = @transform_4, window_bounds = array<i64: 1, 1, 32>}, {pipeline_mode = #tpu.pipeline_mode<synchronous>, transform_indices = @transform_5, window_bounds = array<i64: 1, 32, 4>}, {pipeline_mode = #tpu.pipeline_mode<synchronous>, transform_indices = @transform_6, window_bounds = array<i64: 1, 1, 4>}, {transform_indices = @transform_7, window_bounds = array<i64: 1, 8, 4>}]} {
    %c0 = arith.constant 0 : index
    %c0_0 = arith.constant 0 : index
    %0 = vector.load %arg2[%c0, %c0_0] : memref<8x4xf32, #tpu.memory_space<vmem>>, vector<8x4xf32>
    %c0_1 = arith.constant 0 : index
    %c0_2 = arith.constant 0 : index
    %c0_3 = arith.constant 0 : index
    %1 = vector.load %arg3[%c0_1, %c0_2, %c0_3] : memref<1x4x64xf32, #tpu.memory_space<vmem>>, vector<1x4x64xf32>
    %2 = vector.shape_cast %1 : vector<1x4x64xf32> to vector<4x64xf32>
    %cst = arith.constant dense<0.000000e+00> : vector<8x64xf32>
    %3 = tpu.matmul %0, %2, %cst {dimension_numbers = #tpu.dot_dimension_numbers<[1], [0], [0], [1], [0, 0, 1, 1], [], []>} : vector<8x4xf32>, vector<4x64xf32>, vector<8x64xf32> -> vector<8x64xf32>
    %c0_4 = arith.constant 0 : index
    %c0_5 = arith.constant 0 : index
    %c0_6 = arith.constant 0 : index
    %4 = vector.load %arg4[%c0_4, %c0_5, %c0_6] : memref<1x1x64xf32, #tpu.memory_space<vmem>>, vector<1x1x64xf32>
    %5 = vector.shape_cast %4 : vector<1x1x64xf32> to vector<1x64xf32>
    %6 = vector.broadcast %5 : vector<1x64xf32> to vector<8x64xf32>
    %7 = arith.addf %3, %6 : vector<8x64xf32>
    %cst_7 = arith.constant 5.000000e-01 : f32
    %8 = vector.broadcast %cst_7 : f32 to vector<8x64xf32>
    %9 = arith.mulf %8, %7 : vector<8x64xf32>
    %10 = math.tanh %9 : vector<8x64xf32>
    %cst_8 = arith.constant 1.000000e+00 : f32
    %11 = vector.broadcast %cst_8 : f32 to vector<8x64xf32>
    %12 = arith.addf %10, %11 : vector<8x64xf32>
    %cst_9 = arith.constant 5.000000e-01 : f32
    %13 = vector.broadcast %cst_9 : f32 to vector<8x64xf32>
    %14 = arith.mulf %13, %12 : vector<8x64xf32>
    %c0_10 = arith.constant 0 : index
    %c0_11 = arith.constant 0 : index
    %c0_12 = arith.constant 0 : index
    %15 = vector.load %arg5[%c0_10, %c0_11, %c0_12] : memref<1x64x32xf32, #tpu.memory_space<vmem>>, vector<1x64x32xf32>
    %16 = vector.shape_cast %15 : vector<1x64x32xf32> to vector<64x32xf32>
    %cst_13 = arith.constant dense<0.000000e+00> : vector<8x32xf32>
    %17 = tpu.matmul %14, %16, %cst_13 {dimension_numbers = #tpu.dot_dimension_numbers<[1], [0], [0], [1], [0, 0, 1, 1], [], []>} : vector<8x64xf32>, vector<64x32xf32>, vector<8x32xf32> -> vector<8x32xf32>
    %c0_14 = arith.constant 0 : index
    %c0_15 = arith.constant 0 : index
    %c0_16 = arith.constant 0 : index
    %18 = vector.load %arg6[%c0_14, %c0_15, %c0_16] : memref<1x1x32xf32, #tpu.memory_space<vmem>>, vector<1x1x32xf32>
    %19 = vector.shape_cast %18 : vector<1x1x32xf32> to vector<1x32xf32>
    %20 = vector.broadcast %19 : vector<1x32xf32> to vector<8x32xf32>
    %21 = arith.addf %17, %20 : vector<8x32xf32>
    %cst_17 = arith.constant 5.000000e-01 : f32
    %22 = vector.broadcast %cst_17 : f32 to vector<8x32xf32>
    %23 = arith.mulf %22, %21 : vector<8x32xf32>
    %24 = math.tanh %23 : vector<8x32xf32>
    %cst_18 = arith.constant 1.000000e+00 : f32
    %25 = vector.broadcast %cst_18 : f32 to vector<8x32xf32>
    %26 = arith.addf %24, %25 : vector<8x32xf32>
    %cst_19 = arith.constant 5.000000e-01 : f32
    %27 = vector.broadcast %cst_19 : f32 to vector<8x32xf32>
    %28 = arith.mulf %27, %26 : vector<8x32xf32>
    %c0_20 = arith.constant 0 : index
    %c0_21 = arith.constant 0 : index
    %c0_22 = arith.constant 0 : index
    %29 = vector.load %arg7[%c0_20, %c0_21, %c0_22] : memref<1x32x4xf32, #tpu.memory_space<vmem>>, vector<1x32x4xf32>
    %30 = vector.shape_cast %29 : vector<1x32x4xf32> to vector<32x4xf32>
    %cst_23 = arith.constant dense<0.000000e+00> : vector<8x4xf32>
    %31 = tpu.matmul %28, %30, %cst_23 {dimension_numbers = #tpu.dot_dimension_numbers<[1], [0], [0], [1], [0, 0, 1, 1], [], []>} : vector<8x32xf32>, vector<32x4xf32>, vector<8x4xf32> -> vector<8x4xf32>
    %c0_24 = arith.constant 0 : index
    %c0_25 = arith.constant 0 : index
    %c0_26 = arith.constant 0 : index
    %32 = vector.load %arg8[%c0_24, %c0_25, %c0_26] : memref<1x1x4xf32, #tpu.memory_space<vmem>>, vector<1x1x4xf32>
    %33 = vector.shape_cast %32 : vector<1x1x4xf32> to vector<1x4xf32>
    %34 = vector.broadcast %33 : vector<1x4xf32> to vector<8x4xf32>
    %35 = arith.addf %31, %34 : vector<8x4xf32>
    %c0_27 = arith.constant 0 : index
    %c0_28 = arith.constant 0 : index
    %c0_29 = arith.constant 0 : index
    %36 = vector.load %arg9[%c0_27, %c0_28, %c0_29] : memref<1x8x4xf32, #tpu.memory_space<vmem>>, vector<1x8x4xf32>
    %37 = vector.shape_cast %36 : vector<1x8x4xf32> to vector<8x4xf32>
    %38 = vector.shape_cast %35 : vector<8x4xf32> to vector<1x8x4xf32>
    tpu.vector_store %arg9[%c0_27, %c0_28, %c0_29], %38 {strides = array<i32>} : memref<1x8x4xf32, #tpu.memory_space<vmem>>, vector<1x8x4xf32>,
    return
  }
  func.func @transform_0(%arg0: i32, %arg1: i32) -> (i32, i32) {
    %c0_i32 = arith.constant 0 : i32
    %c0_i32_0 = arith.constant 0 : i32
    return %arg1, %c0_i32 : i32, i32
  }
  func.func @transform_1(%arg0: i32, %arg1: i32) -> (i32, i32, i32) {
    %c0_i32 = arith.constant 0 : i32
    %c0_i32_0 = arith.constant 0 : i32
    %c0_i32_1 = arith.constant 0 : i32
    return %arg0, %c0_i32, %c0_i32_0 : i32, i32, i32
  }
  func.func @transform_2(%arg0: i32, %arg1: i32) -> (i32, i32, i32) {
    %c0_i32 = arith.constant 0 : i32
    %c0_i32_0 = arith.constant 0 : i32
    %c0_i32_1 = arith.constant 0 : i32
    return %arg0, %c0_i32, %c0_i32_0 : i32, i32, i32
  }
  func.func @transform_3(%arg0: i32, %arg1: i32) -> (i32, i32, i32) {
    %c0_i32 = arith.constant 0 : i32
    %c0_i32_0 = arith.constant 0 : i32
    %c0_i32_1 = arith.constant 0 : i32
    return %arg0, %c0_i32, %c0_i32_0 : i32, i32, i32
  }
  func.func @transform_4(%arg0: i32, %arg1: i32) -> (i32, i32, i32) {
    %c0_i32 = arith.constant 0 : i32
    %c0_i32_0 = arith.constant 0 : i32
    %c0_i32_1 = arith.constant 0 : i32
    return %arg0, %c0_i32, %c0_i32_0 : i32, i32, i32
  }
  func.func @transform_5(%arg0: i32, %arg1: i32) -> (i32, i32, i32) {
    %c0_i32 = arith.constant 0 : i32
    %c0_i32_0 = arith.constant 0 : i32
    %c0_i32_1 = arith.constant 0 : i32
    return %arg0, %c0_i32, %c0_i32_0 : i32, i32, i32
  }
  func.func @transform_6(%arg0: i32, %arg1: i32) -> (i32, i32, i32) {
    %c0_i32 = arith.constant 0 : i32
    %c0_i32_0 = arith.constant 0 : i32
    %c0_i32_1 = arith.constant 0 : i32
    return %arg0, %c0_i32, %c0_i32_0 : i32, i32, i32
  }
  func.func @transform_7(%arg0: i32, %arg1: i32) -> (i32, i32, i32) {
    %c0_i32 = arith.constant 0 : i32
    %c0_i32_0 = arith.constant 0 : i32
    return %arg0, %arg1, %c0_i32 : i32, i32, i32
  }
}

module attributes {stable_mosaic.version = 11 : i64} {
  func.func @kernel(%arg0: i32, %arg1: i32, %arg2: memref<8x4xf32, #tpu.memory_space<vmem>>, %arg3: memref<1x4x64xf32, #tpu.memory_space<vmem>>, %arg4: memref<1x1x64xf32, #tpu.memory_space<vmem>>, %arg5: memref<1x64x32xf32, #tpu.memory_space<vmem>>, %arg6: memref<1x1x32xf32, #tpu.memory_space<vmem>>, %arg7: memref<1x32x4xf32, #tpu.memory_space<vmem>>, %arg8: memref<1x1x4xf32, #tpu.memory_space<vmem>>, %arg9: memref<1x8x4xf32, #tpu.memory_space<vmem>>) attributes {dimension_semantics = [#tpu.dimension_semantics<parallel>, #tpu.dimension_semantics<parallel>], iteration_bounds = array<i64: 1, 1>, scalar_prefetch = 0 : i64, scratch_operands = 0 : i64, tpu.core_type = #tpu.core_type<tc>, window_params = [{transform_indices = @transform_0, window_bounds = array<i64: 8, 4>}, {transform_indices = @transform_1, window_bounds = array<i64: 1, 4, 64>}, {transform_indices = @transform_2, window_bounds = array<i64: 1, 1, 64>}, {transform_indices = @transform_3, window_bounds = array<i64: 1, 64, 32>}, {transform_indices = @transform_4, window_bounds = array<i64: 1, 1, 32>}, {transform_indices = @transform_5, window_bounds = array<i64: 1, 32, 4>}, {transform_indices = @transform_6, window_bounds = array<i64: 1, 1, 4>}, {transform_indices = @transform_7, window_bounds = array<i64: 1, 8, 4>}]} {
    %c0 = arith.constant 0 : index
    %c0_0 = arith.constant 0 : index
    %0 = vector.load %arg2[%c0, %c0_0] : memref<8x4xf32, #tpu.memory_space<vmem>>, vector<8x4xf32>
    %c0_1 = arith.constant 0 : index
    %c0_2 = arith.constant 0 : index
    %c0_3 = arith.constant 0 : index
    %1 = vector.load %arg3[%c0_1, %c0_2, %c0_3] : memref<1x4x64xf32, #tpu.memory_space<vmem>>, vector<1x4x64xf32>
    %2 = vector.shape_cast %1 : vector<1x4x64xf32> to vector<4x64xf32>
    %cst = arith.constant dense<0.000000e+00> : vector<8x64xf32>
    %3 = tpu.matmul %0, %2, %cst {dimension_numbers = #tpu.dot_dimension_numbers<[1], [0], [0], [1], [0, 0, 1, 1], [], []>} : vector<8x4xf32>, vector<4x64xf32>, vector<8x64xf32> -> vector<8x64xf32>
    %c0_4 = arith.constant 0 : index
    %c0_5 = arith.constant 0 : index
    %c0_6 = arith.constant 0 : index
    %4 = vector.load %arg4[%c0_4, %c0_5, %c0_6] : memref<1x1x64xf32, #tpu.memory_space<vmem>>, vector<1x1x64xf32>
    %5 = vector.shape_cast %4 : vector<1x1x64xf32> to vector<1x64xf32>
    %6 = vector.broadcast %5 : vector<1x64xf32> to vector<8x64xf32>
    %7 = arith.addf %3, %6 : vector<8x64xf32>
    %cst_7 = arith.constant 5.000000e-01 : f32
    %8 = vector.broadcast %cst_7 : f32 to vector<8x64xf32>
    %9 = arith.mulf %8, %7 : vector<8x64xf32>
    %10 = math.tanh %9 : vector<8x64xf32>
    %cst_8 = arith.constant 1.000000e+00 : f32
    %11 = vector.broadcast %cst_8 : f32 to vector<8x64xf32>
    %12 = arith.addf %10, %11 : vector<8x64xf32>
    %cst_9 = arith.constant 5.000000e-01 : f32
    %13 = vector.broadcast %cst_9 : f32 to vector<8x64xf32>
    %14 = arith.mulf %13, %12 : vector<8x64xf32>
    %c0_10 = arith.constant 0 : index
    %c0_11 = arith.constant 0 : index
    %c0_12 = arith.constant 0 : index
    %15 = vector.load %arg5[%c0_10, %c0_11, %c0_12] : memref<1x64x32xf32, #tpu.memory_space<vmem>>, vector<1x64x32xf32>
    %16 = vector.shape_cast %15 : vector<1x64x32xf32> to vector<64x32xf32>
    %cst_13 = arith.constant dense<0.000000e+00> : vector<8x32xf32>
    %17 = tpu.matmul %14, %16, %cst_13 {dimension_numbers = #tpu.dot_dimension_numbers<[1], [0], [0], [1], [0, 0, 1, 1], [], []>} : vector<8x64xf32>, vector<64x32xf32>, vector<8x32xf32> -> vector<8x32xf32>
    %c0_14 = arith.constant 0 : index
    %c0_15 = arith.constant 0 : index
    %c0_16 = arith.constant 0 : index
    %18 = vector.load %arg6[%c0_14, %c0_15, %c0_16] : memref<1x1x32xf32, #tpu.memory_space<vmem>>, vector<1x1x32xf32>
    %19 = vector.shape_cast %18 : vector<1x1x32xf32> to vector<1x32xf32>
    %20 = vector.broadcast %19 : vector<1x32xf32> to vector<8x32xf32>
    %21 = arith.addf %17, %20 : vector<8x32xf32>
    %cst_17 = arith.constant 5.000000e-01 : f32
    %22 = vector.broadcast %cst_17 : f32 to vector<8x32xf32>
    %23 = arith.mulf %22, %21 : vector<8x32xf32>
    %24 = math.tanh %23 : vector<8x32xf32>
    %cst_18 = arith.constant 1.000000e+00 : f32
    %25 = vector.broadcast %cst_18 : f32 to vector<8x32xf32>
    %26 = arith.addf %24, %25 : vector<8x32xf32>
    %cst_19 = arith.constant 5.000000e-01 : f32
    %27 = vector.broadcast %cst_19 : f32 to vector<8x32xf32>
    %28 = arith.mulf %27, %26 : vector<8x32xf32>
    %c0_20 = arith.constant 0 : index
    %c0_21 = arith.constant 0 : index
    %c0_22 = arith.constant 0 : index
    %29 = vector.load %arg7[%c0_20, %c0_21, %c0_22] : memref<1x32x4xf32, #tpu.memory_space<vmem>>, vector<1x32x4xf32>
    %30 = vector.shape_cast %29 : vector<1x32x4xf32> to vector<32x4xf32>
    %cst_23 = arith.constant dense<0.000000e+00> : vector<8x4xf32>
    %31 = tpu.matmul %28, %30, %cst_23 {dimension_numbers = #tpu.dot_dimension_numbers<[1], [0], [0], [1], [0, 0, 1, 1], [], []>} : vector<8x32xf32>, vector<32x4xf32>, vector<8x4xf32> -> vector<8x4xf32>
    %c0_24 = arith.constant 0 : index
    %c0_25 = arith.constant 0 : index
    %c0_26 = arith.constant 0 : index
    %32 = vector.load %arg8[%c0_24, %c0_25, %c0_26] : memref<1x1x4xf32, #tpu.memory_space<vmem>>, vector<1x1x4xf32>
    %33 = vector.shape_cast %32 : vector<1x1x4xf32> to vector<1x4xf32>
    %34 = vector.broadcast %33 : vector<1x4xf32> to vector<8x4xf32>
    %35 = arith.addf %31, %34 : vector<8x4xf32>
    %c0_27 = arith.constant 0 : index
    %c0_28 = arith.constant 0 : index
    %c0_29 = arith.constant 0 : index
    %36 = vector.load %arg9[%c0_27, %c0_28, %c0_29] : memref<1x8x4xf32, #tpu.memory_space<vmem>>, vector<1x8x4xf32>
    %37 = vector.shape_cast %36 : vector<1x8x4xf32> to vector<8x4xf32>
    %38 = vector.shape_cast %35 : vector<8x4xf32> to vector<1x8x4xf32>
    tpu.vector_store %arg9[%c0_27, %c0_28, %c0_29], %38 {strides = array<i32>} : memref<1x8x4xf32, #tpu.memory_space<vmem>>, vector<1x8x4xf32>,
    return
  }
  func.func @transform_0(%arg0: i32, %arg1: i32) -> (i32, i32) {
    %c0_i32 = arith.constant 0 : i32
    %c0_i32_0 = arith.constant 0 : i32
    return %arg1, %c0_i32 : i32, i32
  }
  func.func @transform_1(%arg0: i32, %arg1: i32) -> (i32, i32, i32) {
    %c0_i32 = arith.constant 0 : i32
    %c0_i32_0 = arith.constant 0 : i32
    %c0_i32_1 = arith.constant 0 : i32
    return %arg0, %c0_i32, %c0_i32_0 : i32, i32, i32
  }
  func.func @transform_2(%arg0: i32, %arg1: i32) -> (i32, i32, i32) {
    %c0_i32 = arith.constant 0 : i32
    %c0_i32_0 = arith.constant 0 : i32
    %c0_i32_1 = arith.constant 0 : i32
    return %arg0, %c0_i32, %c0_i32_0 : i32, i32, i32
  }
  func.func @transform_3(%arg0: i32, %arg1: i32) -> (i32, i32, i32) {
    %c0_i32 = arith.constant 0 : i32
    %c0_i32_0 = arith.constant 0 : i32
    %c0_i32_1 = arith.constant 0 : i32
    return %arg0, %c0_i32, %c0_i32_0 : i32, i32, i32
  }
  func.func @transform_4(%arg0: i32, %arg1: i32) -> (i32, i32, i32) {
    %c0_i32 = arith.constant 0 : i32
    %c0_i32_0 = arith.constant 0 : i32
    %c0_i32_1 = arith.constant 0 : i32
    return %arg0, %c0_i32, %c0_i32_0 : i32, i32, i32
  }
  func.func @transform_5(%arg0: i32, %arg1: i32) -> (i32, i32, i32) {
    %c0_i32 = arith.constant 0 : i32
    %c0_i32_0 = arith.constant 0 : i32
    %c0_i32_1 = arith.constant 0 : i32
    return %arg0, %c0_i32, %c0_i32_0 : i32, i32, i32
  }
  func.func @transform_6(%arg0: i32, %arg1: i32) -> (i32, i32, i32) {
    %c0_i32 = arith.constant 0 : i32
    %c0_i32_0 = arith.constant 0 : i32
    %c0_i32_1 = arith.constant 0 : i32
    return %arg0, %c0_i32, %c0_i32_0 : i32, i32, i32
  }
  func.func @transform_7(%arg0: i32, %arg1: i32) -> (i32, i32, i32) {
    %c0_i32 = arith.constant 0 : i32
    %c0_i32_0 = arith.constant 0 : i32
    return %arg0, %arg1, %c0_i32 : i32, i32, i32
  }
}

</mosaic_0001>

<bundles_post_ra>
// kernel: tpu_custom_call.1
= control target key start
LH: loop header
LB: loop body
LE: loop exit
PB: predicated region body
PF: predicated region fallthrough
CT: control target
= control target key end

     0   :  { %vm39_vm0 = vcmask 1043456   ;;  %vm35_vm1 = vcmask 31744   ;;  %v364_v0 = vmov 0.0   ;;  %vm365_vm2 = vmmov 0   ;;  %s462_s1 = inlined_call_operand.vmem [shape: f32[1,4,64], index: 1, kind: input, shape index: {}]   ;;  %s463_s0 = inlined_call_operand.vmem [shape: f32[8,4], index: 0, kind: input, shape index: {}]   ;;  %s464_s3 = inlined_call_operand.vmem [shape: f32[1,64,32], index: 3, kind: input, shape index: {}]   ;;  %s465_s2 = inlined_call_operand.vmem [shape: f32[1,1,64], index: 2, kind: input, shape index: {}]   ;;  %s466_s5 = inlined_call_operand.vmem [shape: f32[1,32,4], index: 5, kind: input, shape index: {}]   ;;  %s467_s4 = inlined_call_operand.vmem [shape: f32[1,1,32], index: 4, kind: input, shape index: {}]   ;;  %s468_s6 = inlined_call_operand.vmem [shape: f32[1,1,4], index: 6, kind: input, shape index: {}]   ;;  %s469_s7 = inlined_call_operand.vmem [shape: f32[1,8,4], index: 7, kind: output, shape index: {}]  }
   0x1   :  { %323 = vmatprep.subr.mxu0 %v364_v0  ;;  %v27_v1 = vld [vmem:[%s462_s1] sm:$0xf]  ;;  %325 = vmatprep.mubr.msk.f32.mxu0 %vm365_vm2, %v364_v0  ;;  %v124_v3 = vld [vmem:[%s464_s3 + $0x38] sm:$0xff]  ;;  %v123_v4 = vld [vmem:[%s464_s3 + $0x30] sm:$0xff]  ;;  %vm132_vm3 = vcmask 523264   ;;  %vm221_vm4 = vcmask 261120  }
   0x2   :  { %v26_v2 = vld [vmem:[%s463_s0] sm:$0xff]  ;;  %324 = vmatpush3.msk.msra.mxu0 %vm39_vm0, %v27_v1  ;;  %328 = vmatprep.subr.mxu1 %v364_v0  ;;  %v122_v5 = vld [vmem:[%s464_s3 + $0x28] sm:$0xff]  ;;  %v120_v7 = vld [vmem:[%s464_s3 + $0x18] sm:$0xff] }
   0x3   :  { %326 = vmatmul.mubr.msk.f32.vlgmr.msra.gmra.mxu0 %vm35_vm1, %v26_v2  ;;  %344 = vmatprep.mubr.msk.f32.mxu1 %vm365_vm2, %v364_v0  ;;  %v121_v6 = vld [vmem:[%s464_s3 + $0x20] sm:$0xff]  ;;  %v119_v8 = vld [vmem:[%s464_s3 + $0x10] sm:$0xff]  ;;  %v118_v9 = vld [vmem:[%s464_s3 + $0x8] sm:$0xff] }
   0x4   :  { %347 = vmatprep.subr.mxu0 %v364_v0  ;;  %355 = vmatprep.mubr.msk.f32.mxu0 %vm365_vm2, %v364_v0  ;;  %v117_v10 = vld [vmem:[%s464_s3] sm:$0xff]  ;;  %v213_v19 = vld [vmem:[%s466_s5 + $0x18] sm:$0xff]  ;;  %v212_v20 = vld [vmem:[%s466_s5 + $0x10] sm:$0xff] }
   0x5   :  { %329 = vmatpush3.msra.mxu1 %v124_v3  ;;  %v300_v11 = vld [vmem:[%s465_s2] ss:$0 sm:$0xff]  ;;  %348 = vmatpush3.msra.mxu0 %v213_v19  ;;  %v211_v21 = vld [vmem:[%s466_s5 + $0x8] sm:$0xff] }
   0x6   :  { %330 = vmatprep.subr.mxu1 %v364_v0  ;;  %349 = vmatprep.subr.mxu0 %v364_v0  ;;  %v210_v22 = vld [vmem:[%s466_s5] sm:$0xff] }
   0x7   :  { %331 = vmatpush3.msra.mxu1 %v123_v4  ;;  %350 = vmatpush3.msra.mxu0 %v212_v20  ;;  %v303_v23 = vld [vmem:[%s467_s4] ss:$0 sm:$0xff] }
   0x8   :  { %332 = vmatprep.subr.mxu1 %v364_v0  ;;  %351 = vmatprep.subr.mxu0 %v364_v0  ;;  %v305_v31 = vld [vmem:[%s468_s6] ss:$0 sm:$0xff] }
   0x9   :  { %333 = vmatpush3.msra.mxu1 %v122_v5  ;;  %352 = vmatpush3.msra.mxu0 %v211_v21 }
   0xa   :  { %334 = vmatprep.subr.mxu1 %v364_v0  ;;  %353 = vmatprep.subr.mxu0 %v364_v0 }
   0xb   :  { %335 = vmatpush3.msra.mxu1 %v121_v6  ;;  %354 = vmatpush3.msra.mxu0 %v210_v22 }
   0xc   :  { %336 = vmatprep.subr.mxu1 %v364_v0 }
   0xd   :  { %337 = vmatpush3.msra.mxu1 %v120_v7 }
   0xe   :  { %338 = vmatprep.subr.mxu1 %v364_v0 }
   0xf   :  { %339 = vmatpush3.msra.mxu1 %v119_v8 }
  0x10   :  { %340 = vmatprep.subr.mxu1 %v364_v0 }
  0x11   :  { %341 = vmatpush3.msra.mxu1 %v118_v9 }
  0x12   :  { %342 = vmatprep.subr.mxu1 %v364_v0 }
  0x13   :  { %343 = vmatpush3.msra.mxu1 %v117_v10 }
  0xc3   :  { %v109_v12 = vpop.f32.mrf.mxu0 }
  0xc4   :  { %v110_v13 = vadd.f32 %v300_v11, %v109_v12 }
  0xc5   :  { %v327_v14 = vpop.f32.mrf.mxu0 }
  0xc6   :  { %v113_v15 = vmul.f32 0.5, %v110_v13 }
  0xc8   :  { %360 = vtanh.f32 %v113_v15 }
  0xd5   :  { %v361_v16 = vpop.eup %360 }
  0xd6   :  { %v115_v17 = vadd.f32 1.0, %v361_v16 }
  0xd8   :  { %v116_v18 = vmul.f32 0.5, %v115_v17 }
  0xda   :  { %345 = vmatmul.mubr.msk.f32.vlgmr.msra.gmra.mxu1 %vm132_vm3, %v116_v18 }
 0x19a   :  { %v202_v24 = vpop.f32.mrf.mxu1 }
 0x19b   :  { %v203_v25 = vadd.f32 %v303_v23, %v202_v24 }
 0x19c   :  { %v346_v26 = vpop.f32.mrf.mxu1 }
 0x19d   :  { %v206_v27 = vmul.f32 0.5, %v203_v25 }
 0x19f   :  { %362 = vtanh.f32 %v206_v27 }
 0x1ac   :  { %v363_v28 = vpop.eup %362 }
 0x1ad   :  { %v208_v29 = vadd.f32 1.0, %v363_v28 }
 0x1af   :  { %v209_v30 = vmul.f32 0.5, %v208_v29 }
 0x1b1   :  { %356 = vmatmul.mubr.msk.f32.vlgmr.msra.gmra.mxu0 %vm221_vm4, %v209_v30 }
 0x271   :  { %v291_v32 = vpop.f32.mrf.mxu0 }
 0x272   :  { %v292_v33 = vadd.f32 %v305_v31, %v291_v32 }
 0x273   :  { %v357_v34 = vpop.f32.mrf.mxu0 }
 0x274   :  { %295 = vst.msk [vmem:[%s469_s7] sm:$0xff] %vm35_vm1, %v292_v33 }

// kernel: tpu_custom_call.1
= control target key start
LH: loop header
LB: loop body
LE: loop exit
PB: predicated region body
PF: predicated region fallthrough
CT: control target
= control target key end

     0   :  { %vm39_vm0 = vcmask 1043456   ;;  %vm35_vm1 = vcmask 31744   ;;  %v364_v0 = vmov 0.0   ;;  %vm365_vm2 = vmmov 0   ;;  %s462_s1 = inlined_call_operand.vmem [shape: f32[1,4,64], index: 1, kind: input, shape index: {}]   ;;  %s463_s0 = inlined_call_operand.vmem [shape: f32[8,4], index: 0, kind: input, shape index: {}]   ;;  %s464_s3 = inlined_call_operand.vmem [shape: f32[1,64,32], index: 3, kind: input, shape index: {}]   ;;  %s465_s2 = inlined_call_operand.vmem [shape: f32[1,1,64], index: 2, kind: input, shape index: {}]   ;;  %s466_s5 = inlined_call_operand.vmem [shape: f32[1,32,4], index: 5, kind: input, shape index: {}]   ;;  %s467_s4 = inlined_call_operand.vmem [shape: f32[1,1,32], index: 4, kind: input, shape index: {}]   ;;  %s468_s6 = inlined_call_operand.vmem [shape: f32[1,1,4], index: 6, kind: input, shape index: {}]   ;;  %s469_s7 = inlined_call_operand.vmem [shape: f32[1,8,4], index: 7, kind: output, shape index: {}]  }
   0x1   :  { %323 = vmatprep.subr.mxu0 %v364_v0  ;;  %v27_v1 = vld [vmem:[%s462_s1] sm:$0xf]  ;;  %325 = vmatprep.mubr.msk.f32.mxu0 %vm365_vm2, %v364_v0  ;;  %v124_v3 = vld [vmem:[%s464_s3 + $0x38] sm:$0xff]  ;;  %v123_v4 = vld [vmem:[%s464_s3 + $0x30] sm:$0xff]  ;;  %vm132_vm3 = vcmask 523264   ;;  %vm221_vm4 = vcmask 261120  }
   0x2   :  { %v26_v2 = vld [vmem:[%s463_s0] sm:$0xff]  ;;  %324 = vmatpush3.msk.msra.mxu0 %vm39_vm0, %v27_v1  ;;  %328 = vmatprep.subr.mxu1 %v364_v0  ;;  %v122_v5 = vld [vmem:[%s464_s3 + $0x28] sm:$0xff]  ;;  %v120_v7 = vld [vmem:[%s464_s3 + $0x18] sm:$0xff] }
   0x3   :  { %326 = vmatmul.mubr.msk.f32.vlgmr.msra.gmra.mxu0 %vm35_vm1, %v26_v2  ;;  %344 = vmatprep.mubr.msk.f32.mxu1 %vm365_vm2, %v364_v0  ;;  %v121_v6 = vld [vmem:[%s464_s3 + $0x20] sm:$0xff]  ;;  %v119_v8 = vld [vmem:[%s464_s3 + $0x10] sm:$0xff]  ;;  %v118_v9 = vld [vmem:[%s464_s3 + $0x8] sm:$0xff] }
   0x4   :  { %347 = vmatprep.subr.mxu0 %v364_v0  ;;  %355 = vmatprep.mubr.msk.f32.mxu0 %vm365_vm2, %v364_v0  ;;  %v117_v10 = vld [vmem:[%s464_s3] sm:$0xff]  ;;  %v213_v19 = vld [vmem:[%s466_s5 + $0x18] sm:$0xff]  ;;  %v212_v20 = vld [vmem:[%s466_s5 + $0x10] sm:$0xff] }
   0x5   :  { %329 = vmatpush3.msra.mxu1 %v124_v3  ;;  %v300_v11 = vld [vmem:[%s465_s2] ss:$0 sm:$0xff]  ;;  %348 = vmatpush3.msra.mxu0 %v213_v19  ;;  %v211_v21 = vld [vmem:[%s466_s5 + $0x8] sm:$0xff] }
   0x6   :  { %330 = vmatprep.subr.mxu1 %v364_v0  ;;  %349 = vmatprep.subr.mxu0 %v364_v0  ;;  %v210_v22 = vld [vmem:[%s466_s5] sm:$0xff] }
   0x7   :  { %331 = vmatpush3.msra.mxu1 %v123_v4  ;;  %350 = vmatpush3.msra.mxu0 %v212_v20  ;;  %v303_v23 = vld [vmem:[%s467_s4] ss:$0 sm:$0xff] }
   0x8   :  { %332 = vmatprep.subr.mxu1 %v364_v0  ;;  %351 = vmatprep.subr.mxu0 %v364_v0  ;;  %v305_v31 = vld [vmem:[%s468_s6] ss:$0 sm:$0xff] }
   0x9   :  { %333 = vmatpush3.msra.mxu1 %v122_v5  ;;  %352 = vmatpush3.msra.mxu0 %v211_v21 }
   0xa   :  { %334 = vmatprep.subr.mxu1 %v364_v0  ;;  %353 = vmatprep.subr.mxu0 %v364_v0 }
   0xb   :  { %335 = vmatpush3.msra.mxu1 %v121_v6  ;;  %354 = vmatpush3.msra.mxu0 %v210_v22 }
   0xc   :  { %336 = vmatprep.subr.mxu1 %v364_v0 }
   0xd   :  { %337 = vmatpush3.msra.mxu1 %v120_v7 }
   0xe   :  { %338 = vmatprep.subr.mxu1 %v364_v0 }
   0xf   :  { %339 = vmatpush3.msra.mxu1 %v119_v8 }
  0x10   :  { %340 = vmatprep.subr.mxu1 %v364_v0 }
  0x11   :  { %341 = vmatpush3.msra.mxu1 %v118_v9 }
  0x12   :  { %342 = vmatprep.subr.mxu1 %v364_v0 }
  0x13   :  { %343 = vmatpush3.msra.mxu1 %v117_v10 }
  0xc3   :  { %v109_v12 = vpop.f32.mrf.mxu0 }
  0xc4   :  { %v110_v13 = vadd.f32 %v300_v11, %v109_v12 }
  0xc5   :  { %v327_v14 = vpop.f32.mrf.mxu0 }
  0xc6   :  { %v113_v15 = vmul.f32 0.5, %v110_v13 }
  0xc8   :  { %360 = vtanh.f32 %v113_v15 }
  0xd5   :  { %v361_v16 = vpop.eup %360 }
  0xd6   :  { %v115_v17 = vadd.f32 1.0, %v361_v16 }
  0xd8   :  { %v116_v18 = vmul.f32 0.5, %v115_v17 }
  0xda   :  { %345 = vmatmul.mubr.msk.f32.vlgmr.msra.gmra.mxu1 %vm132_vm3, %v116_v18 }
 0x19a   :  { %v202_v24 = vpop.f32.mrf.mxu1 }
 0x19b   :  { %v203_v25 = vadd.f32 %v303_v23, %v202_v24 }
 0x19c   :  { %v346_v26 = vpop.f32.mrf.mxu1 }
 0x19d   :  { %v206_v27 = vmul.f32 0.5, %v203_v25 }
 0x19f   :  { %362 = vtanh.f32 %v206_v27 }
 0x1ac   :  { %v363_v28 = vpop.eup %362 }
 0x1ad   :  { %v208_v29 = vadd.f32 1.0, %v363_v28 }
 0x1af   :  { %v209_v30 = vmul.f32 0.5, %v208_v29 }
 0x1b1   :  { %356 = vmatmul.mubr.msk.f32.vlgmr.msra.gmra.mxu0 %vm221_vm4, %v209_v30 }
 0x271   :  { %v291_v32 = vpop.f32.mrf.mxu0 }
 0x272   :  { %v292_v33 = vadd.f32 %v305_v31, %v291_v32 }
 0x273   :  { %v357_v34 = vpop.f32.mrf.mxu0 }
 0x274   :  { %295 = vst.msk [vmem:[%s469_s7] sm:$0xff] %vm35_vm1, %v292_v33 }

</bundles_post_ra>
